<compile_context>
chip_gen: v6e
topology: v6e:2x2x1
jax: 0.10.0
libtpu: 0.0.40
codegen_flags: <defaults>
</compile_context>

<pallas_src>
import functools

import jax
import jax.numpy as jnp
from jax.experimental import pallas as pl
from jax.experimental.pallas import tpu as pltpu


_LN_EPS = 1e-5


def _text_encoder_kernel(x_ref, w0_ref, wh_ref, vec_ref, o_ref):
    """Fused 5x [Linear + LayerNorm + ReLU]; Dropout == identity (eval mode).

    x_ref   : (TB, d_in)        activation tile
    w0_ref  : (d_in, F)         first-layer weight (bf16 or f32)
    wh_ref  : (L-1, F, F)       stacked hidden-layer weights
    vec_ref : (16, F)  f32      packed rows [b, gamma, beta] x 5 layers (padded)
    o_ref   : (TB, F)           output tile
    """
    n_layers = wh_ref.shape[0] + 1
    h = x_ref[...].astype(jnp.float32)
    for layer in range(n_layers):
        w = w0_ref[...] if layer == 0 else wh_ref[layer - 1]
        b = vec_ref[3 * layer:3 * layer + 1, :]
        g = vec_ref[3 * layer + 1:3 * layer + 2, :]
        be = vec_ref[3 * layer + 2:3 * layer + 3, :]

        # Linear: cast LHS to the stored weight dtype (bf16 MXU fast path on
        # v6e/v7x), accumulate in f32.
        h = jnp.dot(h.astype(w.dtype), w, preferred_element_type=jnp.float32)
        h = h + b

        # LayerNorm over the feature axis (biased variance), all f32 math.
        mean = jnp.mean(h, axis=-1, keepdims=True)
        centered = h - mean
        var = jnp.mean(centered * centered, axis=-1, keepdims=True)
        h = centered * jax.lax.rsqrt(var + _LN_EPS) * g + be

        # ReLU
        h = jnp.maximum(h, 0.0)

    o_ref[...] = h.astype(o_ref.dtype)


def prepare_text_encoder_params(params, weight_dtype=jnp.bfloat16):
    """One-time packing of per-layer (w, b, gamma, beta) tuples.

    Returns (w0, wh_stack, vec_slab):
      w0       : (text_len, F)   weight_dtype
      wh_stack : (L-1, F, F)     weight_dtype
      vec_slab : (16, F) f32     rows [b, gamma, beta] per layer, zero-padded
    Bias / gamma / beta are kept in f32 on purpose (LN precision).
    """
    w0 = params[0][0].astype(weight_dtype)
    wh = jnp.stack([w.astype(weight_dtype) for (w, _, _, _) in params[1:]],
                   axis=0)
    feature = w0.shape[1]
    n_layers = len(params)
    rows = 3 * n_layers
    rows_pad = ((rows + 7) // 8) * 8
    vec = jnp.zeros((rows_pad, feature), jnp.float32)
    for layer, (_, b, g, be) in enumerate(params):
        vec = vec.at[3 * layer].set(b.astype(jnp.float32))
        vec = vec.at[3 * layer + 1].set(g.astype(jnp.float32))
        vec = vec.at[3 * layer + 2].set(be.astype(jnp.float32))
    return w0, wh, vec


@functools.partial(jax.jit, static_argnames=("block_batch",))
def text_encoder_forward(x, packed_params, block_batch=1024):
    """Eval-mode TextEncoder forward. x: (B, text_len) -> (B, feature_channel)."""
    w0, wh, vec = packed_params
    B, d_in = x.shape
    feature = w0.shape[1]
    out_dtype = x.dtype

    if B <= block_batch:
        # Small batch: single invocation, whole arrays resident in VMEM,
        # exact shapes (no padding, no post-slice).
        spec = pl.BlockSpec(memory_space=pltpu.MemorySpace.VMEM)
        return pl.pallas_call(
            _text_encoder_kernel,
            out_shape=jax.ShapeDtypeStruct((B, feature), out_dtype),
            in_specs=[spec, spec, spec, spec],
            out_specs=spec,
        )(x, w0, wh, vec)

    # Large batch: tile over batch with a parallel grid (megacore on v7x),
    # weights kept VMEM-resident via constant index_maps.
    tb = block_batch
    b_pad = pl.cdiv(B, tb) * tb
    if b_pad != B:
        x = jnp.pad(x, ((0, b_pad - B), (0, 0)))
    out = pl.pallas_call(
        _text_encoder_kernel,
        out_shape=jax.ShapeDtypeStruct((b_pad, feature), out_dtype),
        grid=(b_pad // tb,),
        in_specs=[
            pl.BlockSpec((tb, d_in), lambda i: (i, 0)),
            pl.BlockSpec(w0.shape, lambda i: (0, 0)),
            pl.BlockSpec(wh.shape, lambda i: (0, 0, 0)),
            pl.BlockSpec(vec.shape, lambda i: (0, 0)),
        ],
        out_specs=pl.BlockSpec((tb, feature), lambda i: (i, 0)),
        compiler_params=pltpu.CompilerParams(
            dimension_semantics=("parallel",)),
    )(x, w0, wh, vec)
    return out[:B]


def init_text_encoder_params(key, text_len, feature_channel):
    """Deterministic synthetic f32 parameters matching the PyTorch module shapes."""
    params = []
    dims_in = [text_len] + [feature_channel] * 4
    for d_in in dims_in:
        key, kw, kb = jax.random.split(key, 3)
        bound = 1.0 / float(d_in) ** 0.5
        w = jax.random.uniform(kw, (d_in, feature_channel), jnp.float32,
                               minval=-bound, maxval=bound)
        b = jax.random.uniform(kb, (feature_channel,), jnp.float32,
                               minval=-bound, maxval=bound)
        gamma = jnp.ones((feature_channel,), jnp.float32)
        beta = jnp.zeros((feature_channel,), jnp.float32)
        params.append((w, b, gamma, beta))
    return params


def _reference_forward(x, params, weight_dtype):
    """Pure-JAX reference with the same dtype policy as the kernel."""
    h = x.astype(jnp.float32)
    for (w, b, gamma, beta) in params:
        w = w.astype(weight_dtype)
        h = jnp.dot(h.astype(weight_dtype), w,
                    preferred_element_type=jnp.float32).astype(jnp.float32)
        h = h + b.astype(jnp.float32)
        mean = jnp.mean(h, axis=-1, keepdims=True)
        var = jnp.mean((h - mean) ** 2, axis=-1, keepdims=True)
        h = (h - mean) * jax.lax.rsqrt(var + _LN_EPS) \
            * gamma.astype(jnp.float32) + beta.astype(jnp.float32)
        h = jnp.maximum(h, 0.0)
    return h


if __name__ == "__main__":
    # Small, module-consistent shapes: batch=2, text_len=32, feature_channel=128
    batch = 2
    text_len = 32
    feature_channel = 128

    key = jax.random.PRNGKey(0)
    key, kx = jax.random.split(key)
    x = jax.random.normal(kx, (batch, text_len), jnp.float32)

    params = init_text_encoder_params(key, text_len, feature_channel)

    # --- f32 weights (tight check), small-batch no-grid path ------------------
    packed_f32 = prepare_text_encoder_params(params, weight_dtype=jnp.float32)
    out = jax.block_until_ready(text_encoder_forward(x, packed_f32))
    ref = _reference_forward(x, params, jnp.float32)
    assert out.shape == (batch, feature_channel)
    assert jnp.allclose(out, ref, atol=1e-4, rtol=1e-4), \
        float(jnp.max(jnp.abs(out - ref)))

    # --- bf16 weights (default), LN params / math stay f32 --------------------
    packed_bf16 = prepare_text_encoder_params(params, weight_dtype=jnp.bfloat16)
    out_bf16 = jax.block_until_ready(text_encoder_forward(x, packed_bf16))
    ref_bf16 = _reference_forward(x, params, jnp.bfloat16)
    assert out_bf16.shape == (batch, feature_channel)
    assert bool(jnp.all(jnp.isfinite(out_bf16)))
    assert jnp.allclose(out_bf16, ref_bf16, atol=5e-2, rtol=5e-2), \
        float(jnp.max(jnp.abs(out_bf16 - ref_bf16)))

    # --- batch-tiled grid path (exercised with a small tile for the test) -----
    big_batch = 40
    key, kx2 = jax.random.split(key)
    x_big = jax.random.normal(kx2, (big_batch, text_len), jnp.float32)
    out_big = jax.block_until_ready(
        text_encoder_forward(x_big, packed_f32, block_batch=16))
    ref_big = _reference_forward(x_big, params, jnp.float32)
    assert out_big.shape == (big_batch, feature_channel)
    assert jnp.allclose(out_big, ref_big, atol=1e-4, rtol=1e-4), \
        float(jnp.max(jnp.abs(out_big - ref_big)))

    print("KERNEL_OK")
</pallas_src>

<mosaic_0001>
module attributes {stable_mosaic.version = 11 : i64} {
  func.func @_text_encoder_kernel(%arg0: memref<2x32xf32, #tpu.memory_space<vmem>>, %arg1: memref<32x128xf32, #tpu.memory_space<vmem>>, %arg2: memref<4x128x128xf32, #tpu.memory_space<vmem>>, %arg3: memref<16x128xf32, #tpu.memory_space<vmem>>, %arg4: memref<2x128xf32, #tpu.memory_space<vmem>>) attributes {dimension_semantics = [], scalar_prefetch = 0 : i64, scratch_operands = 0 : i64, tpu.core_type = #tpu.core_type<tc>} {
    %c0 = arith.constant 0 : index
    %c0_0 = arith.constant 0 : index
    %0 = vector.load %arg0[%c0, %c0_0] : memref<2x32xf32, #tpu.memory_space<vmem>>, vector<2x32xf32>
    %c0_1 = arith.constant 0 : index
    %c0_2 = arith.constant 0 : index
    %1 = vector.load %arg1[%c0_1, %c0_2] : memref<32x128xf32, #tpu.memory_space<vmem>>, vector<32x128xf32>
    %c0_3 = arith.constant 0 : index
    %c0_4 = arith.constant 0 : index
    %2 = vector.load %arg3[%c0_3, %c0_4] : memref<16x128xf32, #tpu.memory_space<vmem>>, vector<1x128xf32>
    %c1 = arith.constant 1 : index
    %c0_5 = arith.constant 0 : index
    %3 = vector.load %arg3[%c1, %c0_5] : memref<16x128xf32, #tpu.memory_space<vmem>>, vector<1x128xf32>
    %c2 = arith.constant 2 : index
    %c0_6 = arith.constant 0 : index
    %4 = vector.load %arg3[%c2, %c0_6] : memref<16x128xf32, #tpu.memory_space<vmem>>, vector<1x128xf32>
    %cst = arith.constant dense<0.000000e+00> : vector<2x128xf32>
    %5 = tpu.matmul %0, %1, %cst {dimension_numbers = #tpu.dot_dimension_numbers<[1], [0], [0], [1], [0, 0, 1, 1], [], []>} : vector<2x32xf32>, vector<32x128xf32>, vector<2x128xf32> -> vector<2x128xf32>
    %6 = vector.broadcast %2 : vector<1x128xf32> to vector<2x128xf32>
    %7 = arith.addf %5, %6 : vector<2x128xf32>
    %cst_7 = arith.constant dense<0.000000e+00> : vector<2xf32>
    %8 = vector.multi_reduction <add>, %7, %cst_7 [1] : vector<2x128xf32> to vector<2xf32>
    %9 = vector.shape_cast %8 : vector<2xf32> to vector<2x1xf32>
    %cst_8 = arith.constant 1.280000e+02 : f32
    %10 = vector.broadcast %cst_8 : f32 to vector<2x1xf32>
    %11 = arith.divf %9, %10 : vector<2x1xf32>
    %12 = vector.broadcast %11 : vector<2x1xf32> to vector<2x128xf32>
    %13 = arith.subf %7, %12 : vector<2x128xf32>
    %14 = arith.mulf %13, %13 : vector<2x128xf32>
    %cst_9 = arith.constant dense<0.000000e+00> : vector<2xf32>
    %15 = vector.multi_reduction <add>, %14, %cst_9 [1] : vector<2x128xf32> to vector<2xf32>
    %16 = vector.shape_cast %15 : vector<2xf32> to vector<2x1xf32>
    %cst_10 = arith.constant 1.280000e+02 : f32
    %17 = vector.broadcast %cst_10 : f32 to vector<2x1xf32>
    %18 = arith.divf %16, %17 : vector<2x1xf32>
    %cst_11 = arith.constant 9.99999974E-6 : f32
    %19 = vector.broadcast %cst_11 : f32 to vector<2x1xf32>
    %20 = arith.addf %18, %19 : vector<2x1xf32>
    %21 = math.rsqrt %20 : vector<2x1xf32>
    %22 = vector.broadcast %21 : vector<2x1xf32> to vector<2x128xf32>
    %23 = arith.mulf %13, %22 : vector<2x128xf32>
    %24 = vector.broadcast %3 : vector<1x128xf32> to vector<2x128xf32>
    %25 = arith.mulf %23, %24 : vector<2x128xf32>
    %26 = vector.broadcast %4 : vector<1x128xf32> to vector<2x128xf32>
    %27 = arith.addf %25, %26 : vector<2x128xf32>
    %cst_12 = arith.constant 0.000000e+00 : f32
    %28 = vector.broadcast %cst_12 : f32 to vector<2x128xf32>
    %29 = arith.maximumf %27, %28 : vector<2x128xf32>
    %c0_13 = arith.constant 0 : index
    %c0_14 = arith.constant 0 : index
    %c0_15 = arith.constant 0 : index
    %30 = vector.load %arg2[%c0_13, %c0_14, %c0_15] : memref<4x128x128xf32, #tpu.memory_space<vmem>>, vector<1x128x128xf32>
    %31 = vector.shape_cast %30 : vector<1x128x128xf32> to vector<128x128xf32>
    %c3 = arith.constant 3 : index
    %c0_16 = arith.constant 0 : index
    %32 = vector.load %arg3[%c3, %c0_16] : memref<16x128xf32, #tpu.memory_space<vmem>>, vector<1x128xf32>
    %c4 = arith.constant 4 : index
    %c0_17 = arith.constant 0 : index
    %33 = vector.load %arg3[%c4, %c0_17] : memref<16x128xf32, #tpu.memory_space<vmem>>, vector<1x128xf32>
    %c5 = arith.constant 5 : index
    %c0_18 = arith.constant 0 : index
    %34 = vector.load %arg3[%c5, %c0_18] : memref<16x128xf32, #tpu.memory_space<vmem>>, vector<1x128xf32>
    %cst_19 = arith.constant dense<0.000000e+00> : vector<2x128xf32>
    %35 = tpu.matmul %29, %31, %cst_19 {dimension_numbers = #tpu.dot_dimension_numbers<[1], [0], [0], [1], [0, 0, 1, 1], [], []>} : vector<2x128xf32>, vector<128x128xf32>, vector<2x128xf32> -> vector<2x128xf32>
    %36 = vector.broadcast %32 : vector<1x128xf32> to vector<2x128xf32>
    %37 = arith.addf %35, %36 : vector<2x128xf32>
    %cst_20 = arith.constant dense<0.000000e+00> : vector<2xf32>
    %38 = vector.multi_reduction <add>, %37, %cst_20 [1] : vector<2x128xf32> to vector<2xf32>
    %39 = vector.shape_cast %38 : vector<2xf32> to vector<2x1xf32>
    %cst_21 = arith.constant 1.280000e+02 : f32
    %40 = vector.broadcast %cst_21 : f32 to vector<2x1xf32>
    %41 = arith.divf %39, %40 : vector<2x1xf32>
    %42 = vector.broadcast %41 : vector<2x1xf32> to vector<2x128xf32>
    %43 = arith.subf %37, %42 : vector<2x128xf32>
    %44 = arith.mulf %43, %43 : vector<2x128xf32>
    %cst_22 = arith.constant dense<0.000000e+00> : vector<2xf32>
    %45 = vector.multi_reduction <add>, %44, %cst_22 [1] : vector<2x128xf32> to vector<2xf32>
    %46 = vector.shape_cast %45 : vector<2xf32> to vector<2x1xf32>
    %cst_23 = arith.constant 1.280000e+02 : f32
    %47 = vector.broadcast %cst_23 : f32 to vector<2x1xf32>
    %48 = arith.divf %46, %47 : vector<2x1xf32>
    %cst_24 = arith.constant 9.99999974E-6 : f32
    %49 = vector.broadcast %cst_24 : f32 to vector<2x1xf32>
    %50 = arith.addf %48, %49 : vector<2x1xf32>
    %51 = math.rsqrt %50 : vector<2x1xf32>
    %52 = vector.broadcast %51 : vector<2x1xf32> to vector<2x128xf32>
    %53 = arith.mulf %43, %52 : vector<2x128xf32>
    %54 = vector.broadcast %33 : vector<1x128xf32> to vector<2x128xf32>
    %55 = arith.mulf %53, %54 : vector<2x128xf32>
    %56 = vector.broadcast %34 : vector<1x128xf32> to vector<2x128xf32>
    %57 = arith.addf %55, %56 : vector<2x128xf32>
    %cst_25 = arith.constant 0.000000e+00 : f32
    %58 = vector.broadcast %cst_25 : f32 to vector<2x128xf32>
    %59 = arith.maximumf %57, %58 : vector<2x128xf32>
    %c1_26 = arith.constant 1 : index
    %c0_27 = arith.constant 0 : index
    %c0_28 = arith.constant 0 : index
    %60 = vector.load %arg2[%c1_26, %c0_27, %c0_28] : memref<4x128x128xf32, #tpu.memory_space<vmem>>, vector<1x128x128xf32>
    %61 = vector.shape_cast %60 : vector<1x128x128xf32> to vector<128x128xf32>
    %c6 = arith.constant 6 : index
    %c0_29 = arith.constant 0 : index
    %62 = vector.load %arg3[%c6, %c0_29] : memref<16x128xf32, #tpu.memory_space<vmem>>, vector<1x128xf32>
    %c7 = arith.constant 7 : index
    %c0_30 = arith.constant 0 : index
    %63 = vector.load %arg3[%c7, %c0_30] : memref<16x128xf32, #tpu.memory_space<vmem>>, vector<1x128xf32>
    %c8 = arith.constant 8 : index
    %c0_31 = arith.constant 0 : index
    %64 = vector.load %arg3[%c8, %c0_31] : memref<16x128xf32, #tpu.memory_space<vmem>>, vector<1x128xf32>
    %cst_32 = arith.constant dense<0.000000e+00> : vector<2x128xf32>
    %65 = tpu.matmul %59, %61, %cst_32 {dimension_numbers = #tpu.dot_dimension_numbers<[1], [0], [0], [1], [0, 0, 1, 1], [], []>} : vector<2x128xf32>, vector<128x128xf32>, vector<2x128xf32> -> vector<2x128xf32>
    %66 = vector.broadcast %62 : vector<1x128xf32> to vector<2x128xf32>
    %67 = arith.addf %65, %66 : vector<2x128xf32>
    %cst_33 = arith.constant dense<0.000000e+00> : vector<2xf32>
    %68 = vector.multi_reduction <add>, %67, %cst_33 [1] : vector<2x128xf32> to vector<2xf32>
    %69 = vector.shape_cast %68 : vector<2xf32> to vector<2x1xf32>
    %cst_34 = arith.constant 1.280000e+02 : f32
    %70 = vector.broadcast %cst_34 : f32 to vector<2x1xf32>
    %71 = arith.divf %69, %70 : vector<2x1xf32>
    %72 = vector.broadcast %71 : vector<2x1xf32> to vector<2x128xf32>
    %73 = arith.subf %67, %72 : vector<2x128xf32>
    %74 = arith.mulf %73, %73 : vector<2x128xf32>
    %cst_35 = arith.constant dense<0.000000e+00> : vector<2xf32>
    %75 = vector.multi_reduction <add>, %74, %cst_35 [1] : vector<2x128xf32> to vector<2xf32>
    %76 = vector.shape_cast %75 : vector<2xf32> to vector<2x1xf32>
    %cst_36 = arith.constant 1.280000e+02 : f32
    %77 = vector.broadcast %cst_36 : f32 to vector<2x1xf32>
    %78 = arith.divf %76, %77 : vector<2x1xf32>
    %cst_37 = arith.constant 9.99999974E-6 : f32
    %79 = vector.broadcast %cst_37 : f32 to vector<2x1xf32>
    %80 = arith.addf %78, %79 : vector<2x1xf32>
    %81 = math.rsqrt %80 : vector<2x1xf32>
    %82 = vector.broadcast %81 : vector<2x1xf32> to vector<2x128xf32>
    %83 = arith.mulf %73, %82 : vector<2x128xf32>
    %84 = vector.broadcast %63 : vector<1x128xf32> to vector<2x128xf32>
    %85 = arith.mulf %83, %84 : vector<2x128xf32>
    %86 = vector.broadcast %64 : vector<1x128xf32> to vector<2x128xf32>
    %87 = arith.addf %85, %86 : vector<2x128xf32>
    %cst_38 = arith.constant 0.000000e+00 : f32
    %88 = vector.broadcast %cst_38 : f32 to vector<2x128xf32>
    %89 = arith.maximumf %87, %88 : vector<2x128xf32>
    %c2_39 = arith.constant 2 : index
    %c0_40 = arith.constant 0 : index
    %c0_41 = arith.constant 0 : index
    %90 = vector.load %arg2[%c2_39, %c0_40, %c0_41] : memref<4x128x128xf32, #tpu.memory_space<vmem>>, vector<1x128x128xf32>
    %91 = vector.shape_cast %90 : vector<1x128x128xf32> to vector<128x128xf32>
    %c9 = arith.constant 9 : index
    %c0_42 = arith.constant 0 : index
    %92 = vector.load %arg3[%c9, %c0_42] : memref<16x128xf32, #tpu.memory_space<vmem>>, vector<1x128xf32>
    %c10 = arith.constant 10 : index
    %c0_43 = arith.constant 0 : index
    %93 = vector.load %arg3[%c10, %c0_43] : memref<16x128xf32, #tpu.memory_space<vmem>>, vector<1x128xf32>
    %c11 = arith.constant 11 : index
    %c0_44 = arith.constant 0 : index
    %94 = vector.load %arg3[%c11, %c0_44] : memref<16x128xf32, #tpu.memory_space<vmem>>, vector<1x128xf32>
    %cst_45 = arith.constant dense<0.000000e+00> : vector<2x128xf32>
    %95 = tpu.matmul %89, %91, %cst_45 {dimension_numbers = #tpu.dot_dimension_numbers<[1], [0], [0], [1], [0, 0, 1, 1], [], []>} : vector<2x128xf32>, vector<128x128xf32>, vector<2x128xf32> -> vector<2x128xf32>
    %96 = vector.broadcast %92 : vector<1x128xf32> to vector<2x128xf32>
    %97 = arith.addf %95, %96 : vector<2x128xf32>
    %cst_46 = arith.constant dense<0.000000e+00> : vector<2xf32>
    %98 = vector.multi_reduction <add>, %97, %cst_46 [1] : vector<2x128xf32> to vector<2xf32>
    %99 = vector.shape_cast %98 : vector<2xf32> to vector<2x1xf32>
    %cst_47 = arith.constant 1.280000e+02 : f32
    %100 = vector.broadcast %cst_47 : f32 to vector<2x1xf32>
    %101 = arith.divf %99, %100 : vector<2x1xf32>
    %102 = vector.broadcast %101 : vector<2x1xf32> to vector<2x128xf32>
    %103 = arith.subf %97, %102 : vector<2x128xf32>
    %104 = arith.mulf %103, %103 : vector<2x128xf32>
    %cst_48 = arith.constant dense<0.000000e+00> : vector<2xf32>
    %105 = vector.multi_reduction <add>, %104, %cst_48 [1] : vector<2x128xf32> to vector<2xf32>
    %106 = vector.shape_cast %105 : vector<2xf32> to vector<2x1xf32>
    %cst_49 = arith.constant 1.280000e+02 : f32
    %107 = vector.broadcast %cst_49 : f32 to vector<2x1xf32>
    %108 = arith.divf %106, %107 : vector<2x1xf32>
    %cst_50 = arith.constant 9.99999974E-6 : f32
    %109 = vector.broadcast %cst_50 : f32 to vector<2x1xf32>
    %110 = arith.addf %108, %109 : vector<2x1xf32>
    %111 = math.rsqrt %110 : vector<2x1xf32>
    %112 = vector.broadcast %111 : vector<2x1xf32> to vector<2x128xf32>
    %113 = arith.mulf %103, %112 : vector<2x128xf32>
    %114 = vector.broadcast %93 : vector<1x128xf32> to vector<2x128xf32>
    %115 = arith.mulf %113, %114 : vector<2x128xf32>
    %116 = vector.broadcast %94 : vector<1x128xf32> to vector<2x128xf32>
    %117 = arith.addf %115, %116 : vector<2x128xf32>
    %cst_51 = arith.constant 0.000000e+00 : f32
    %118 = vector.broadcast %cst_51 : f32 to vector<2x128xf32>
    %119 = arith.maximumf %117, %118 : vector<2x128xf32>
    %c3_52 = arith.constant 3 : index
    %c0_53 = arith.constant 0 : index
    %c0_54 = arith.constant 0 : index
    %120 = vector.load %arg2[%c3_52, %c0_53, %c0_54] : memref<4x128x128xf32, #tpu.memory_space<vmem>>, vector<1x128x128xf32>
    %121 = vector.shape_cast %120 : vector<1x128x128xf32> to vector<128x128xf32>
    %c12 = arith.constant 12 : index
    %c0_55 = arith.constant 0 : index
    %122 = vector.load %arg3[%c12, %c0_55] : memref<16x128xf32, #tpu.memory_space<vmem>>, vector<1x128xf32>
    %c13 = arith.constant 13 : index
    %c0_56 = arith.constant 0 : index
    %123 = vector.load %arg3[%c13, %c0_56] : memref<16x128xf32, #tpu.memory_space<vmem>>, vector<1x128xf32>
    %c14 = arith.constant 14 : index
    %c0_57 = arith.constant 0 : index
    %124 = vector.load %arg3[%c14, %c0_57] : memref<16x128xf32, #tpu.memory_space<vmem>>, vector<1x128xf32>
    %cst_58 = arith.constant dense<0.000000e+00> : vector<2x128xf32>
    %125 = tpu.matmul %119, %121, %cst_58 {dimension_numbers = #tpu.dot_dimension_numbers<[1], [0], [0], [1], [0, 0, 1, 1], [], []>} : vector<2x128xf32>, vector<128x128xf32>, vector<2x128xf32> -> vector<2x128xf32>
    %126 = vector.broadcast %122 : vector<1x128xf32> to vector<2x128xf32>
    %127 = arith.addf %125, %126 : vector<2x128xf32>
    %cst_59 = arith.constant dense<0.000000e+00> : vector<2xf32>
    %128 = vector.multi_reduction <add>, %127, %cst_59 [1] : vector<2x128xf32> to vector<2xf32>
    %129 = vector.shape_cast %128 : vector<2xf32> to vector<2x1xf32>
    %cst_60 = arith.constant 1.280000e+02 : f32
    %130 = vector.broadcast %cst_60 : f32 to vector<2x1xf32>
    %131 = arith.divf %129, %130 : vector<2x1xf32>
    %132 = vector.broadcast %131 : vector<2x1xf32> to vector<2x128xf32>
    %133 = arith.subf %127, %132 : vector<2x128xf32>
    %134 = arith.mulf %133, %133 : vector<2x128xf32>
    %cst_61 = arith.constant dense<0.000000e+00> : vector<2xf32>
    %135 = vector.multi_reduction <add>, %134, %cst_61 [1] : vector<2x128xf32> to vector<2xf32>
    %136 = vector.shape_cast %135 : vector<2xf32> to vector<2x1xf32>
    %cst_62 = arith.constant 1.280000e+02 : f32
    %137 = vector.broadcast %cst_62 : f32 to vector<2x1xf32>
    %138 = arith.divf %136, %137 : vector<2x1xf32>
    %cst_63 = arith.constant 9.99999974E-6 : f32
    %139 = vector.broadcast %cst_63 : f32 to vector<2x1xf32>
    %140 = arith.addf %138, %139 : vector<2x1xf32>
    %141 = math.rsqrt %140 : vector<2x1xf32>
    %142 = vector.broadcast %141 : vector<2x1xf32> to vector<2x128xf32>
    %143 = arith.mulf %133, %142 : vector<2x128xf32>
    %144 = vector.broadcast %123 : vector<1x128xf32> to vector<2x128xf32>
    %145 = arith.mulf %143, %144 : vector<2x128xf32>
    %146 = vector.broadcast %124 : vector<1x128xf32> to vector<2x128xf32>
    %147 = arith.addf %145, %146 : vector<2x128xf32>
    %cst_64 = arith.constant 0.000000e+00 : f32
    %148 = vector.broadcast %cst_64 : f32 to vector<2x128xf32>
    %149 = arith.maximumf %147, %148 : vector<2x128xf32>
    %c0_65 = arith.constant 0 : index
    %c0_66 = arith.constant 0 : index
    %150 = vector.load %arg4[%c0_65, %c0_66] : memref<2x128xf32, #tpu.memory_space<vmem>>, vector<2x128xf32>
    tpu.vector_store %arg4[%c0_65, %c0_66], %149 {strides = array<i32>} : memref<2x128xf32, #tpu.memory_space<vmem>>, vector<2x128xf32>,
    return
  }
}

</mosaic_0001>

<bundles_post_ra>
// kernel: text_encoder_forward.1
= control target key start
LH: loop header
LB: loop body
LE: loop exit
PB: predicated region body
PF: predicated region fallthrough
CT: control target
= control target key end

     0   :  { %9 = vsyncpa [#allocation3], 0  ;;  %s1185_s0 = inlined_call_operand.hbm [shape: f32[2,32], index: 0, kind: input, shape index: {}]   ;;  %s1186_s1 = inlined_call_operand.hbm [shape: f32[32,128], index: 1, kind: input, shape index: {}]   ;;  %s1187_s2 = inlined_call_operand.hbm [shape: f32[4,128,128], index: 2, kind: input, shape index: {}]   ;;  %s1188_s3 = inlined_call_operand.hbm [shape: f32[16,128], index: 3, kind: input, shape index: {}]   ;;  %s1189_s4 = inlined_call_operand.hbm [shape: f32[2,128], index: 4, kind: output, shape index: {}]  }
   0x1   :  { %10 = vsyncpa [#allocation6], 0 }
   0x2   :  { %11 = vsyncpa [#allocation9], 0 }
   0x3   :  { %12 = vsyncpa [#allocation4], 0  ;;  %s1039_s15 = smov [#allocation5]  }
   0x4   :  { %s28_s16 = sshll.u32 %s1039_s15, 4  ;;  %s29_s16 = int_to_ptr.vmem [resolvable:$true] %s28_s16 }
   0x5   :  { %s939_s17 = scalar_lea.vmem %s29_s16, 512  ;;  %p944_p1 = scmp.lt.s32.totalorder %s29_s16, %s29_s16 }
   0x6   :  { %p940_p0 = scmp.ne.s32.totalorder %s29_s16, %s939_s17  ;;  %p945_p2 = scmp.lt.s32.totalorder %s939_s17, %s939_s17 }
   0x8   :  { %p946_p3 = por %p945_p2, %p944_p1 }
   0xa   :  { %p947_p4 = pnand %p946_p3, %p940_p0 }
   0xc   :  { %950 = shalt.err (!%p947_p4)
}
   0xd   :  { %s1040_s18 = smov 128   ;;  %s1041_s19 = smov 8  }
   0xe   :  { %34 = dma.hbm_to_vmem [thread:$0]  %s1186_s1, 512, %s29_s16, [#allocation6], %s1040_s18, %s1040_s18, %s1041_s19  }
   0xf   :  { %s1042_s22 = smov [#allocation2]   ;;  %s1043_s24 = smov [#allocation7]  }
  0x10   :  { %s19_s23 = sshll.u32 %s1042_s22, 4  ;;  %s40_s25 = sshll.u32 %s1043_s24, 4  ;;  %s20_s23 = int_to_ptr.vmem [resolvable:$true] %s19_s23  ;;  %s41_s25 = int_to_ptr.vmem [resolvable:$true] %s40_s25 }
  0x11   :  { %s959_s26 = scalar_lea.vmem %s20_s23, 32  ;;  %p964_p6 = scmp.lt.s32.totalorder %s20_s23, %s20_s23 }
  0x12   :  { %p960_p5 = scmp.ne.s32.totalorder %s20_s23, %s959_s26  ;;  %p965_p7 = scmp.lt.s32.totalorder %s959_s26, %s959_s26 }
  0x14   :  { %p966_p8 = por %p965_p7, %p964_p6 }
  0x16   :  { %p967_p9 = pnand %p966_p8, %p960_p5 }
  0x18   :  { %970 = shalt.err (!%p967_p9)
}
  0x19   :  { %22 = dma.hbm_to_vmem [thread:$0]  %s1185_s0, 32, %s20_s23, [#allocation3]  }
  0x1a   :  { %s979_s29 = scalar_lea.vmem %s41_s25, 8192  ;;  %p984_p11 = scmp.lt.s32.totalorder %s41_s25, %s41_s25 }
  0x1b   :  { %p980_p10 = scmp.ne.s32.totalorder %s41_s25, %s979_s29  ;;  %p985_p12 = scmp.lt.s32.totalorder %s979_s29, %s979_s29 }
  0x1d   :  { %p986_p13 = por %p985_p12, %p984_p11 }
  0x1f   :  { %p987_p0 = pnand %p986_p13, %p980_p10 }
  0x21   :  { %990 = shalt.err (!%p987_p0)
}
  0x22   :  { %46 = dma.hbm_to_vmem [thread:$0]  %s1187_s2, 8192, %s41_s25, [#allocation6], %s1040_s18, %s1040_s18, %s1041_s19  }
  0x23   :  { %s1044_s5 = smov [#allocation8]  }
  0x24   :  { %s52_s6 = sshll.u32 %s1044_s5, 4  ;;  %s53_s6 = int_to_ptr.vmem [resolvable:$true] %s52_s6 }
  0x25   :  { %s999_s7 = scalar_lea.vmem %s53_s6, 256  ;;  %p1004_p2 = scmp.lt.s32.totalorder %s53_s6, %s53_s6 }
  0x26   :  { %p1000_p1 = scmp.ne.s32.totalorder %s53_s6, %s999_s7  ;;  %p1005_p3 = scmp.lt.s32.totalorder %s999_s7, %s999_s7 }
  0x28   :  { %p1006_p4 = por %p1005_p3, %p1004_p2 }
  0x2a   :  { %p1007_p5 = pnand %p1006_p4, %p1000_p1 }
  0x2c   :  { %1010 = shalt.err (!%p1007_p5)
}
  0x2d   :  { %58 = dma.hbm_to_vmem [thread:$0]  %s1188_s3, 256, %s53_s6, [#allocation9], %s1040_s18, %s1040_s18, %s1041_s19  }
  0x2e   :  { %1031 = dma.done.wait [#allocation3], 32  }
  0x2f   :  { %1032 = vsyncadd [#allocation3], 4294967264 }
  0x30   :  { %1033 = dma.done.wait [#allocation6], 8704  }
  0x31   :  { %1034 = vsyncadd [#allocation6], 4294958592 }
  0x32   :  { %1035 = dma.done.wait [#allocation9], 256  }
  0x33   :  { %1036 = vsyncadd [#allocation9], 4294967040  ;;  %v1045_v0 = vmov 0.0   ;;  %vm1046_vm0 = vmmov 0   ;;  %v75_v1 = vld [vmem:[#allocation5 + $0x18] sm:$0xff]  ;;  %v74_v2 = vld [vmem:[#allocation5 + $0x10] sm:$0xff] }
  0x34   :  { %761 = vmatprep.subr.mxu0 %v1045_v0  ;;  %769 = vmatprep.mubr.msk.f32.mxu0 %vm1046_vm0, %v1045_v0  ;;  %v73_v3 = vld [vmem:[#allocation5 + $0x8] sm:$0xff]  ;;  %v72_v4 = vld [vmem:[#allocation5] sm:$0xff]  ;;  %v71_v5 = vld [vmem:[#allocation2] sm:$0x3]  ;;  %vm83_vm1 = vcmask 261120   ;;  %vm157_vm2 = vcmask 1041408  }
  0x35   :  { %772 = vmatprep.subr.mxu1 %v1045_v0  ;;  %804 = vmatprep.mubr.msk.f32.mxu1 %vm1046_vm0, %v1045_v0  ;;  %v672_v6 = vld [vmem:[#allocation8] ss:$0 sm:$0xff]  ;;  %v198_v11 = vld [vmem:[#allocation7 + $0x78] sm:$0xff]  ;;  %v197_v12 = vld [vmem:[#allocation7 + $0x70] sm:$0xff]  ;;  %s1047_s2 = smov [#allocation10]  }
  0x36   :  { %762 = vmatpush3.msra.mxu0 %v75_v1  ;;  %773 = vmatpush3.msra.mxu1 %v198_v11  ;;  %v196_v13 = vld [vmem:[#allocation7 + $0x68] sm:$0xff]  ;;  %v195_v19 = vld [vmem:[#allocation7 + $0x60] sm:$0xff]  ;;  %v194_v20 = vld [vmem:[#allocation7 + $0x58] sm:$0xff]  ;;  %s661_s3 = sshll.u32 %s1047_s2, 4  ;;  %s662_s3 = int_to_ptr.vmem [resolvable:$true] %s661_s3 }
  0x37   :  { %763 = vmatprep.subr.mxu0 %v1045_v0  ;;  %774 = vmatprep.subr.mxu1 %v1045_v0  ;;  %v193_v21 = vld [vmem:[#allocation7 + $0x50] sm:$0xff]  ;;  %v192_v22 = vld [vmem:[#allocation7 + $0x48] sm:$0xff]  ;;  %v191_v23 = vld [vmem:[#allocation7 + $0x40] sm:$0xff]  ;;  %s1011_s9 = scalar_lea.vmem %s662_s3, 32  ;;  %p1016_p7 = scmp.lt.s32.totalorder %s662_s3, %s662_s3 }
  0x38   :  { %764 = vmatpush3.msra.mxu0 %v74_v2  ;;  %775 = vmatpush3.msra.mxu1 %v197_v12  ;;  %v190_v24 = vld [vmem:[#allocation7 + $0x38] sm:$0xff]  ;;  %v189_v25 = vld [vmem:[#allocation7 + $0x30] sm:$0xff]  ;;  %v188_v26 = vld [vmem:[#allocation7 + $0x28] sm:$0xff]  ;;  %p1012_p6 = scmp.ne.s32.totalorder %s662_s3, %s1011_s9  ;;  %p1017_p8 = scmp.lt.s32.totalorder %s1011_s9, %s1011_s9 }
  0x39   :  { %765 = vmatprep.subr.mxu0 %v1045_v0  ;;  %776 = vmatprep.subr.mxu1 %v1045_v0  ;;  %v187_v27 = vld [vmem:[#allocation7 + $0x20] sm:$0xff]  ;;  %v186_v28 = vld [vmem:[#allocation7 + $0x18] sm:$0xff]  ;;  %v185_v29 = vld [vmem:[#allocation7 + $0x10] sm:$0xff] }
  0x3a   :  { %766 = vmatpush3.msra.mxu0 %v73_v3  ;;  %777 = vmatpush3.msra.mxu1 %v196_v13  ;;  %v184_v30 = vld [vmem:[#allocation7 + $0x8] sm:$0xff]  ;;  %v183_v31 = vld [vmem:[#allocation7] sm:$0xff]  ;;  %v316_v47 = vld [vmem:[#allocation7 + $0xf8] sm:$0xff]  ;;  %p1018_p9 = por %p1017_p8, %p1016_p7 }
  0x3b   :  { %767 = vmatprep.subr.mxu0 %v1045_v0  ;;  %778 = vmatprep.subr.mxu1 %v1045_v0  ;;  %v674_v36 = vld [vmem:[#allocation8 + $0x1] ss:$0 sm:$0xff]  ;;  %v675_v38 = vld [vmem:[#allocation8 + $0x2] ss:$0 sm:$0xff]  ;;  %v676_v42 = vld [vmem:[#allocation8 + $0x3] ss:$0 sm:$0xff] }
  0x3c   :  { %768 = vmatpush3.msra.mxu0 %v72_v4  ;;  %779 = vmatpush3.msra.mxu1 %v195_v19  ;;  %v315_v48 = vld [vmem:[#allocation7 + $0xf0] sm:$0xff]  ;;  %v314_v49 = vld [vmem:[#allocation7 + $0xe8] sm:$0xff]  ;;  %v313_v55 = vld [vmem:[#allocation7 + $0xe0] sm:$0xff]  ;;  %p1019_p10 = pnand %p1018_p9, %p1012_p6 }
  0x3d   :  { %770 = vmatmul.mubr.msk.f32.vlgmr.msra.gmra.mxu0 %vm83_vm1, %v71_v5  ;;  %807 = vmatprep.subr.mxu0 %v1045_v0  ;;  %v312_v56 = vld [vmem:[#allocation7 + $0xd8] sm:$0xff]  ;;  %v311_v57 = vld [vmem:[#allocation7 + $0xd0] sm:$0xff]  ;;  %v310_v58 = vld [vmem:[#allocation7 + $0xc8] sm:$0xff] }
  0x3e   :  { %839 = vmatprep.mubr.msk.f32.mxu0 %vm1046_vm0, %v1045_v0  ;;  %780 = vmatprep.subr.mxu1 %v1045_v0  ;;  %v309_v59 = vld [vmem:[#allocation7 + $0xc0] sm:$0xff]  ;;  %v308_v60 = vld [vmem:[#allocation7 + $0xb8] sm:$0xff]  ;;  %v307_v61 = vld [vmem:[#allocation7 + $0xb0] sm:$0xff] }
  0x3f   :  { %781 = vmatpush3.msra.mxu1 %v194_v20  ;;  %808 = vmatpush3.msra.mxu0 %v316_v47  ;;  %v306_v62 = vld [vmem:[#allocation7 + $0xa8] sm:$0xff]  ;;  %v305_v63 = vld [vmem:[#allocation7 + $0xa0] sm:$0xff]  ;;  %v304_v1 = vld [vmem:[#allocation7 + $0x98] sm:$0xff] }
  0x40   :  { %782 = vmatprep.subr.mxu1 %v1045_v0  ;;  %809 = vmatprep.subr.mxu0 %v1045_v0  ;;  %v303_v2 = vld [vmem:[#allocation7 + $0x90] sm:$0xff]  ;;  %v302_v3 = vld [vmem:[#allocation7 + $0x88] sm:$0xff]  ;;  %v301_v4 = vld [vmem:[#allocation7 + $0x80] sm:$0xff] }
  0x41   :  { %783 = vmatpush3.msra.mxu1 %v193_v21  ;;  %810 = vmatpush3.msra.mxu0 %v315_v48  ;;  %v678_v11 = vld [vmem:[#allocation8 + $0x5] ss:$0 sm:$0xff]  ;;  %v434_v20 = vld [vmem:[#allocation7 + $0x178] sm:$0xff]  ;;  %v433_v21 = vld [vmem:[#allocation7 + $0x170] sm:$0xff] }
  0x42   :  { %784 = vmatprep.subr.mxu1 %v1045_v0  ;;  %811 = vmatprep.subr.mxu0 %v1045_v0  ;;  %v681_v47 = vld [vmem:[#allocation8 + $0x8] ss:$0 sm:$0xff] }
  0x43   :  { %785 = vmatpush3.msra.mxu1 %v192_v22  ;;  %812 = vmatpush3.msra.mxu0 %v314_v49  ;;  %v432_v22 = vld [vmem:[#allocation7 + $0x168] sm:$0xff] }
  0x44   :  { %786 = vmatprep.subr.mxu1 %v1045_v0  ;;  %813 = vmatprep.subr.mxu0 %v1045_v0 }
  0x45   :  { %787 = vmatpush3.msra.mxu1 %v191_v23  ;;  %814 = vmatpush3.msra.mxu0 %v313_v55 }
  0x46   :  { %788 = vmatprep.subr.mxu1 %v1045_v0  ;;  %815 = vmatprep.subr.mxu0 %v1045_v0 }
  0x47   :  { %789 = vmatpush3.msra.mxu1 %v190_v24  ;;  %816 = vmatpush3.msra.mxu0 %v312_v56  ;;  %v552_v56 = vld [vmem:[#allocation7 + $0x1f8] sm:$0xff] }
  0x48   :  { %790 = vmatprep.subr.mxu1 %v1045_v0  ;;  %817 = vmatprep.subr.mxu0 %v1045_v0 }
  0x49   :  { %791 = vmatpush3.msra.mxu1 %v189_v25  ;;  %818 = vmatpush3.msra.mxu0 %v311_v57  ;;  %v551_v57 = vld [vmem:[#allocation7 + $0x1f0] sm:$0xff] }
  0x4a   :  { %792 = vmatprep.subr.mxu1 %v1045_v0  ;;  %819 = vmatprep.subr.mxu0 %v1045_v0 }
  0x4b   :  { %793 = vmatpush3.msra.mxu1 %v188_v26  ;;  %820 = vmatpush3.msra.mxu0 %v310_v58  ;;  %v550_v58 = vld [vmem:[#allocation7 + $0x1e8] sm:$0xff] }
  0x4c   :  { %794 = vmatprep.subr.mxu1 %v1045_v0  ;;  %821 = vmatprep.subr.mxu0 %v1045_v0 }
  0x4d   :  { %795 = vmatpush3.msra.mxu1 %v187_v27  ;;  %822 = vmatpush3.msra.mxu0 %v309_v59 }
  0x4e   :  { %796 = vmatprep.subr.mxu1 %v1045_v0  ;;  %823 = vmatprep.subr.mxu0 %v1045_v0 }
  0x4f   :  { %797 = vmatpush3.msra.mxu1 %v186_v28  ;;  %824 = vmatpush3.msra.mxu0 %v308_v60  ;;  %v431_v28 = vld [vmem:[#allocation7 + $0x160] sm:$0xff] }
  0x50   :  { %798 = vmatprep.subr.mxu1 %v1045_v0  ;;  %825 = vmatprep.subr.mxu0 %v1045_v0 }
  0x51   :  { %799 = vmatpush3.msra.mxu1 %v185_v29  ;;  %826 = vmatpush3.msra.mxu0 %v307_v61  ;;  %v430_v29 = vld [vmem:[#allocation7 + $0x158] sm:$0xff] }
  0x52   :  { %800 = vmatprep.subr.mxu1 %v1045_v0  ;;  %827 = vmatprep.subr.mxu0 %v1045_v0 }
  0x53   :  { %801 = vmatpush3.msra.mxu1 %v184_v30  ;;  %828 = vmatpush3.msra.mxu0 %v306_v62  ;;  %v429_v30 = vld [vmem:[#allocation7 + $0x150] sm:$0xff] }
  0x54   :  { %802 = vmatprep.subr.mxu1 %v1045_v0  ;;  %829 = vmatprep.subr.mxu0 %v1045_v0 }
  0x55   :  { %803 = vmatpush3.msra.mxu1 %v183_v31  ;;  %830 = vmatpush3.msra.mxu0 %v305_v63  ;;  %v428_v31 = vld [vmem:[#allocation7 + $0x148] sm:$0xff] }
  0x56   :  { %842 = vmatprep.subr.mxu1 %v1045_v0  ;;  %831 = vmatprep.subr.mxu0 %v1045_v0 }
  0x57   :  { %832 = vmatpush3.msra.mxu0 %v304_v1  ;;  %v549_v1 = vld [vmem:[#allocation7 + $0x1e0] sm:$0xff] }
  0x58   :  { %833 = vmatprep.subr.mxu0 %v1045_v0 }
  0x59   :  { %834 = vmatpush3.msra.mxu0 %v303_v2  ;;  %v548_v2 = vld [vmem:[#allocation7 + $0x1d8] sm:$0xff] }
  0x5a   :  { %835 = vmatprep.subr.mxu0 %v1045_v0 }
  0x5b   :  { %836 = vmatpush3.msra.mxu0 %v302_v3  ;;  %v547_v3 = vld [vmem:[#allocation7 + $0x1d0] sm:$0xff] }
  0x5c   :  { %837 = vmatprep.subr.mxu0 %v1045_v0 }
  0x5d   :  { %838 = vmatpush3.msra.mxu0 %v301_v4  ;;  %v546_v4 = vld [vmem:[#allocation7 + $0x1c8] sm:$0xff] }
  0x5e   :  { %877 = vmatprep.subr.mxu0 %v1045_v0 }
  0xfd   :  { %v153_v7 = vpop.f32.mrf.mxu0 }
  0xfe   :  { %v154_v8 = vadd.f32 %v672_v6, %v153_v7 }
  0xff   :  { %v771_v9 = vpop.f32.mrf.mxu0 }
 0x100   :  { %v158_v10 = vsel %vm157_vm2, %v154_v8, 0.0  ;;  %v677_v9 = vld [vmem:[#allocation8 + $0x4] ss:$0 sm:$0xff] }
 0x101   :  { %159 = vadd.xlane.f32.xlu0 %v158_v10 }
 0x18a   :  { %v160_v14 = vpop.xlane.xlu0 %159 }
 0x18b   :  { %v162_v15 = vmul.f32 0.0078125, %v160_v14 }
 0x18d   :  { %v163_v16 = vsub.f32 %v154_v8, %v162_v15  ;;  %v679_v15 = vld [vmem:[#allocation8 + $0x6] ss:$0 sm:$0xff] }
 0x18f   :  { %v164_v17 = vmul.f32 %v163_v16, %v163_v16 }
 0x191   :  { %v165_v18 = vsel %vm157_vm2, %v164_v17, 0.0 }
 0x192   :  { %166 = vadd.xlane.f32.xlu0 %v165_v18 }
 0x21b   :  { %v167_v32 = vpop.xlane.xlu0 %166 }
 0x21c   :  { %v168_v33 = vmul.f32 0.0078125, %v167_v32  ;;  %v427_v32 = vld [vmem:[#allocation7 + $0x140] sm:$0xff] }
 0x21e   :  { %v169_v34 = vadd.f32 1e-05, %v168_v33  ;;  %v426_v33 = vld [vmem:[#allocation7 + $0x138] sm:$0xff] }
 0x220   :  { %921 = vrsqrt.f32 %v169_v34  ;;  %v425_v34 = vld [vmem:[#allocation7 + $0x130] sm:$0xff] }
 0x22d   :  { %v922_v35 = vpop.eup %921 }
 0x22e   :  { %v171_v37 = vmul.f32 %v922_v35, %v163_v16  ;;  %v424_v35 = vld [vmem:[#allocation7 + $0x128] sm:$0xff] }
 0x230   :  { %v176_v39 = vmul.f32 %v674_v36, %v171_v37  ;;  %v423_v36 = vld [vmem:[#allocation7 + $0x120] sm:$0xff]  ;;  %v422_v37 = vld [vmem:[#allocation7 + $0x118] sm:$0xff] }
 0x232   :  { %v181_v40 = vadd.f32 %v675_v38, %v176_v39  ;;  %v421_v38 = vld [vmem:[#allocation7 + $0x110] sm:$0xff]  ;;  %v420_v39 = vld [vmem:[#allocation7 + $0x108] sm:$0xff] }
 0x234   :  { %v182_v41 = vmax.f32 %v181_v40, 0.0  ;;  %v419_v40 = vld [vmem:[#allocation7 + $0x100] sm:$0xff] }
 0x236   :  { %805 = vmatmul.mubr.f32.vlgmr.msra.gmra.mxu1 %v182_v41 }
 0x237   :  { %874 = vmatprep.mubr.msk.f32.mxu1 %vm1046_vm0, %v1045_v0  ;;  %843 = vmatpush3.msra.mxu1 %v434_v20  ;;  %v684_v20 = vld [vmem:[#allocation8 + $0xb] ss:$0 sm:$0xff] }
 0x238   :  { %844 = vmatprep.subr.mxu1 %v1045_v0 }
 0x239   :  { %845 = vmatpush3.msra.mxu1 %v433_v21 }
 0x23a   :  { %846 = vmatprep.subr.mxu1 %v1045_v0 }
 0x23b   :  { %847 = vmatpush3.msra.mxu1 %v432_v22 }
 0x23c   :  { %848 = vmatprep.subr.mxu1 %v1045_v0 }
 0x23d   :  { %849 = vmatpush3.msra.mxu1 %v431_v28 }
 0x23e   :  { %850 = vmatprep.subr.mxu1 %v1045_v0 }
 0x23f   :  { %851 = vmatpush3.msra.mxu1 %v430_v29 }
 0x240   :  { %852 = vmatprep.subr.mxu1 %v1045_v0 }
 0x241   :  { %853 = vmatpush3.msra.mxu1 %v429_v30 }
 0x242   :  { %854 = vmatprep.subr.mxu1 %v1045_v0 }
 0x243   :  { %855 = vmatpush3.msra.mxu1 %v428_v31 }
 0x244   :  { %856 = vmatprep.subr.mxu1 %v1045_v0 }
 0x245   :  { %857 = vmatpush3.msra.mxu1 %v427_v32 }
 0x246   :  { %858 = vmatprep.subr.mxu1 %v1045_v0 }
 0x247   :  { %859 = vmatpush3.msra.mxu1 %v426_v33 }
 0x248   :  { %860 = vmatprep.subr.mxu1 %v1045_v0 }
 0x249   :  { %861 = vmatpush3.msra.mxu1 %v425_v34 }
 0x24a   :  { %862 = vmatprep.subr.mxu1 %v1045_v0 }
 0x24b   :  { %863 = vmatpush3.msra.mxu1 %v424_v35 }
 0x24c   :  { %864 = vmatprep.subr.mxu1 %v1045_v0 }
 0x24d   :  { %865 = vmatpush3.msra.mxu1 %v423_v36 }
 0x24e   :  { %866 = vmatprep.subr.mxu1 %v1045_v0 }
 0x24f   :  { %867 = vmatpush3.msra.mxu1 %v422_v37  ;;  %v686_v37 = vld [vmem:[#allocation8 + $0xd] ss:$0 sm:$0xff] }
 0x250   :  { %868 = vmatprep.subr.mxu1 %v1045_v0 }
 0x251   :  { %869 = vmatpush3.msra.mxu1 %v421_v38 }
 0x252   :  { %870 = vmatprep.subr.mxu1 %v1045_v0 }
 0x253   :  { %871 = vmatpush3.msra.mxu1 %v420_v39  ;;  %v687_v39 = vld [vmem:[#allocation8 + $0xe] ss:$0 sm:$0xff] }
 0x254   :  { %872 = vmatprep.subr.mxu1 %v1045_v0 }
 0x255   :  { %873 = vmatpush3.msra.mxu1 %v419_v40 }
 0x2f6   :  { %v272_v43 = vpop.f32.mrf.mxu1 }
 0x2f7   :  { %v273_v44 = vadd.f32 %v676_v42, %v272_v43 }
 0x2f8   :  { %v806_v45 = vpop.f32.mrf.mxu1 }
 0x2f9   :  { %v276_v46 = vsel %vm157_vm2, %v273_v44, 0.0  ;;  %v680_v45 = vld [vmem:[#allocation8 + $0x7] ss:$0 sm:$0xff] }
 0x2fa   :  { %277 = vadd.xlane.f32.xlu1 %v276_v46 }
 0x383   :  { %v278_v50 = vpop.xlane.xlu1 %277 }
 0x384   :  { %v279_v51 = vmul.f32 0.0078125, %v278_v50 }
 0x386   :  { %v280_v52 = vsub.f32 %v273_v44, %v279_v51  ;;  %v682_v51 = vld [vmem:[#allocation8 + $0x9] ss:$0 sm:$0xff] }
 0x388   :  { %v281_v53 = vmul.f32 %v280_v52, %v280_v52 }
 0x38a   :  { %v282_v54 = vsel %vm157_vm2, %v281_v53, 0.0 }
 0x38b   :  { %283 = vadd.xlane.f32.xlu1 %v282_v54 }
 0x414   :  { %v284_v5 = vpop.xlane.xlu1 %283 }
 0x415   :  { %v285_v6 = vmul.f32 0.0078125, %v284_v5  ;;  %v545_v5 = vld [vmem:[#allocation7 + $0x1c0] sm:$0xff] }
 0x417   :  { %v286_v7 = vadd.f32 1e-05, %v285_v6  ;;  %v544_v6 = vld [vmem:[#allocation7 + $0x1b8] sm:$0xff] }
 0x419   :  { %923 = vrsqrt.f32 %v286_v7  ;;  %v543_v7 = vld [vmem:[#allocation7 + $0x1b0] sm:$0xff] }
 0x426   :  { %v924_v8 = vpop.eup %923 }
 0x427   :  { %v288_v10 = vmul.f32 %v924_v8, %v280_v52  ;;  %v542_v8 = vld [vmem:[#allocation7 + $0x1a8] sm:$0xff] }
 0x429   :  { %v293_v12 = vmul.f32 %v677_v9, %v288_v10  ;;  %v541_v9 = vld [vmem:[#allocation7 + $0x1a0] sm:$0xff]  ;;  %v540_v10 = vld [vmem:[#allocation7 + $0x198] sm:$0xff] }
 0x42b   :  { %v298_v13 = vadd.f32 %v678_v11, %v293_v12  ;;  %v539_v11 = vld [vmem:[#allocation7 + $0x190] sm:$0xff]  ;;  %v538_v12 = vld [vmem:[#allocation7 + $0x188] sm:$0xff] }
 0x42d   :  { %v299_v14 = vmax.f32 %v298_v13, 0.0  ;;  %v537_v13 = vld [vmem:[#allocation7 + $0x180] sm:$0xff] }
 0x42f   :  { %840 = vmatmul.mubr.f32.vlgmr.msra.gmra.mxu0 %v299_v14 }
 0x430   :  { %909 = vmatprep.mubr.msk.f32.mxu0 %vm1046_vm0, %v1045_v0  ;;  %878 = vmatpush3.msra.mxu0 %v552_v56 }
 0x431   :  { %879 = vmatprep.subr.mxu0 %v1045_v0 }
 0x432   :  { %880 = vmatpush3.msra.mxu0 %v551_v57 }
 0x433   :  { %881 = vmatprep.subr.mxu0 %v1045_v0 }
 0x434   :  { %882 = vmatpush3.msra.mxu0 %v550_v58 }
 0x435   :  { %883 = vmatprep.subr.mxu0 %v1045_v0 }
 0x436   :  { %884 = vmatpush3.msra.mxu0 %v549_v1 }
 0x437   :  { %885 = vmatprep.subr.mxu0 %v1045_v0 }
 0x438   :  { %886 = vmatpush3.msra.mxu0 %v548_v2 }
 0x439   :  { %887 = vmatprep.subr.mxu0 %v1045_v0 }
 0x43a   :  { %888 = vmatpush3.msra.mxu0 %v547_v3 }
 0x43b   :  { %889 = vmatprep.subr.mxu0 %v1045_v0 }
 0x43c   :  { %890 = vmatpush3.msra.mxu0 %v546_v4 }
 0x43d   :  { %891 = vmatprep.subr.mxu0 %v1045_v0 }
 0x43e   :  { %892 = vmatpush3.msra.mxu0 %v545_v5 }
 0x43f   :  { %893 = vmatprep.subr.mxu0 %v1045_v0 }
 0x440   :  { %894 = vmatpush3.msra.mxu0 %v544_v6 }
 0x441   :  { %895 = vmatprep.subr.mxu0 %v1045_v0 }
 0x442   :  { %896 = vmatpush3.msra.mxu0 %v543_v7 }
 0x443   :  { %897 = vmatprep.subr.mxu0 %v1045_v0 }
 0x444   :  { %898 = vmatpush3.msra.mxu0 %v542_v8 }
 0x445   :  { %899 = vmatprep.subr.mxu0 %v1045_v0 }
 0x446   :  { %900 = vmatpush3.msra.mxu0 %v541_v9 }
 0x447   :  { %901 = vmatprep.subr.mxu0 %v1045_v0 }
 0x448   :  { %902 = vmatpush3.msra.mxu0 %v540_v10 }
 0x449   :  { %903 = vmatprep.subr.mxu0 %v1045_v0 }
 0x44a   :  { %904 = vmatpush3.msra.mxu0 %v539_v11 }
 0x44b   :  { %905 = vmatprep.subr.mxu0 %v1045_v0 }
 0x44c   :  { %906 = vmatpush3.msra.mxu0 %v538_v12 }
 0x44d   :  { %907 = vmatprep.subr.mxu0 %v1045_v0 }
 0x44e   :  { %908 = vmatpush3.msra.mxu0 %v537_v13 }
 0x4ef   :  { %v390_v16 = vpop.f32.mrf.mxu0 }
 0x4f0   :  { %v391_v17 = vadd.f32 %v679_v15, %v390_v16 }
 0x4f1   :  { %v841_v18 = vpop.f32.mrf.mxu0 }
 0x4f2   :  { %v394_v19 = vsel %vm157_vm2, %v391_v17, 0.0  ;;  %v683_v18 = vld [vmem:[#allocation8 + $0xa] ss:$0 sm:$0xff] }
 0x4f3   :  { %395 = vadd.xlane.f32.xlu0 %v394_v19 }
 0x57c   :  { %v396_v23 = vpop.xlane.xlu0 %395 }
 0x57d   :  { %v397_v24 = vmul.f32 0.0078125, %v396_v23 }
 0x57f   :  { %v398_v25 = vsub.f32 %v391_v17, %v397_v24  ;;  %v685_v24 = vld [vmem:[#allocation8 + $0xc] ss:$0 sm:$0xff] }
 0x581   :  { %v399_v26 = vmul.f32 %v398_v25, %v398_v25 }
 0x583   :  { %v400_v27 = vsel %vm157_vm2, %v399_v26, 0.0 }
 0x584   :  { %401 = vadd.xlane.f32.xlu1 %v400_v27 }
 0x60d   :  { %v402_v41 = vpop.xlane.xlu1 %401 }
 0x60e   :  { %v403_v42 = vmul.f32 0.0078125, %v402_v41 }
 0x610   :  { %v404_v43 = vadd.f32 1e-05, %v403_v42 }
 0x612   :  { %925 = vrsqrt.f32 %v404_v43 }
 0x61f   :  { %v926_v44 = vpop.eup %925 }
 0x620   :  { %v406_v46 = vmul.f32 %v926_v44, %v398_v25 }
 0x622   :  { %v411_v48 = vmul.f32 %v680_v45, %v406_v46 }
 0x624   :  { %v416_v49 = vadd.f32 %v681_v47, %v411_v48 }
 0x626   :  { %v417_v50 = vmax.f32 %v416_v49, 0.0 }
 0x628   :  { %875 = vmatmul.mubr.f32.vlgmr.msra.gmra.mxu1 %v417_v50 }
 0x6e8   :  { %v508_v52 = vpop.f32.mrf.mxu1 }
 0x6e9   :  { %v509_v53 = vadd.f32 %v682_v51, %v508_v52 }
 0x6ea   :  { %v876_v54 = vpop.f32.mrf.mxu1 }
 0x6eb   :  { %v512_v55 = vsel %vm157_vm2, %v509_v53, 0.0 }
 0x6ec   :  { %513 = vadd.xlane.f32.xlu0 %v512_v55 }
 0x775   :  { %v514_v59 = vpop.xlane.xlu0 %513 }
 0x776   :  { %v515_v60 = vmul.f32 0.0078125, %v514_v59 }
 0x778   :  { %v516_v61 = vsub.f32 %v509_v53, %v515_v60 }
 0x77a   :  { %v517_v62 = vmul.f32 %v516_v61, %v516_v61 }
 0x77c   :  { %v518_v63 = vsel %vm157_vm2, %v517_v62, 0.0 }
 0x77d   :  { %519 = vadd.xlane.f32.xlu1 %v518_v63 }
 0x806   :  { %v520_v14 = vpop.xlane.xlu1 %519 }
 0x807   :  { %v521_v15 = vmul.f32 0.0078125, %v520_v14 }
 0x809   :  { %v522_v16 = vadd.f32 1e-05, %v521_v15 }
 0x80b   :  { %927 = vrsqrt.f32 %v522_v16 }
 0x818   :  { %v928_v17 = vpop.eup %927 }
 0x819   :  { %v524_v19 = vmul.f32 %v928_v17, %v516_v61 }
 0x81b   :  { %v529_v21 = vmul.f32 %v683_v18, %v524_v19 }
 0x81d   :  { %v534_v22 = vadd.f32 %v684_v20, %v529_v21 }
 0x81f   :  { %v535_v23 = vmax.f32 %v534_v22, 0.0 }
 0x821   :  { %910 = vmatmul.mubr.f32.vlgmr.msra.gmra.mxu0 %v535_v23 }
 0x8e1   :  { %v626_v25 = vpop.f32.mrf.mxu0 }
 0x8e2   :  { %v627_v26 = vadd.f32 %v685_v24, %v626_v25 }
 0x8e3   :  { %v911_v27 = vpop.f32.mrf.mxu0 }
 0x8e4   :  { %v630_v28 = vsel %vm157_vm2, %v627_v26, 0.0 }
 0x8e5   :  { %631 = vadd.xlane.f32.xlu0 %v630_v28 }
 0x96e   :  { %v632_v0 = vpop.xlane.xlu0 %631 }
 0x96f   :  { %v633_v29 = vmul.f32 0.0078125, %v632_v0 }
 0x971   :  { %v634_v30 = vsub.f32 %v627_v26, %v633_v29 }
 0x973   :  { %v635_v31 = vmul.f32 %v634_v30, %v634_v30 }
 0x975   :  { %v636_v32 = vsel %vm157_vm2, %v635_v31, 0.0 }
 0x976   :  { %637 = vadd.xlane.f32.xlu1 %v636_v32 }
 0x9ff   :  { %v638_v33 = vpop.xlane.xlu1 %637 }
 0xa00   :  { %v639_v34 = vmul.f32 0.0078125, %v638_v33 }
 0xa02   :  { %v640_v35 = vadd.f32 1e-05, %v639_v34 }
 0xa04   :  { %929 = vrsqrt.f32 %v640_v35 }
 0xa11   :  { %v930_v36 = vpop.eup %929 }
 0xa12   :  { %v642_v38 = vmul.f32 %v930_v36, %v634_v30 }
 0xa14   :  { %v647_v40 = vmul.f32 %v686_v37, %v642_v38 }
 0xa16   :  { %v652_v41 = vadd.f32 %v687_v39, %v647_v40 }
 0xa18   :  { %v653_v42 = vmax.f32 %v652_v41, 0.0 }
 0xa1a   :  { %654 = vst [vmem:[#allocation10] sm:$0x3] %v653_v42 }
 0xa1b   :  { %1022 = shalt.err (!%p1019_p10)
}
 0xa1c   :  { %664 = dma.vmem_to_hbm [thread:$0]  %s662_s3, 32, %s1189_s4, [#allocation4]  }
 0xa1d   :  { %1037 = dma.done.wait [#allocation4], 32  }
 0xa1e   :  { %1038 = vsyncadd [#allocation4], 4294967264 }
 0xa1f   :  { %668 = vsyncpa [#allocation3], 1 }
 0xa20   :  { %669 = vsyncpa [#allocation6], 1 }
 0xa21   :  { %670 = vsyncpa [#allocation9], 1 }
 0xa22   :  { %671 = vsyncpa [#allocation4], 1 }

</bundles_post_ra>
